<compile_context>
chip_gen: v7x
topology: tpu7x:2x2x1
jax: 0.10.0
libtpu: 0.0.40
codegen_flags: <defaults>
</compile_context>

<pallas_src>
import jax
import jax.numpy as jnp
from jax import lax
from jax.experimental import pallas as pl
from jax.experimental.pallas import tpu as pltpu


def gated_embedding_kernel(x_ref, w_ref, b_ref, o_ref):
    """One (expert_group, batch_tile) grid point.

    x_ref: (Bt, D)      batch tile of captions (reused across the group axis)
    w_ref: (D, G*D)     this group's weights, already oriented for x @ W
    b_ref: (G, D)       this group's biases
    o_ref: (Bt, G*D)    lane-dense output slab for this (group, batch) tile
    """
    x = x_ref[...]
    G, D = b_ref.shape                                   # static block shape

    # Static, unrolled per-expert loop: each iteration keeps only a (Bt, D)
    # f32 value live (no (Bt, G*D) monster that spills the 64x4KiB vreg file)
    # and lets the LLO scheduler overlap this expert's epilogue with the next
    # expert's MXU pushes.
    for g in range(G):                                   # python int -> static slices
        lo = g * D
        zg = jnp.dot(x, w_ref[:, lo:lo + D],
                     preferred_element_type=jnp.float32)          # (Bt, D) f32 acc
        zg = zg + b_ref[pl.ds(g, 1), :]                           # (Bt, D) + (1, D)
        zg = zg * jax.nn.sigmoid(zg)                              # SiLU (sigmoid on EUP)
        # F.normalize(dim=-1): z / max(||z||_2, 1e-12)
        #   == z * rsqrt(max(sum(z^2), 1e-24))   -> rsqrt on EUP, no VALU divide
        sumsq = jnp.sum(zg * zg, axis=-1, keepdims=True)          # lane reduce (XLU)
        inv = lax.rsqrt(jnp.maximum(sumsq, 1e-24))
        o_ref[:, lo:lo + D] = (zg * inv).astype(o_ref.dtype)


def gated_embedding(captions, weights, biases, *, experts_per_step=None,
                    b_tile=None, mxu_dtype=None):
    """captions: [B, D] f32; weights: [E, D, D] (PyTorch nn.Linear layout
    W[out, in]); biases: [E, D].
    Returns [B, E, D] f32 == torch.stack([normalize(silu(x @ W_e^T + b_e))], 1).

    experts_per_step: experts per grid step along the group axis (default: all).
    b_tile: batch rows per grid step (default: min(ceil8(B), 256)).
    mxu_dtype: optional narrower dtype (e.g. jnp.bfloat16) for the MXU operands
      only; accumulation and the gate/normalize epilogue stay f32. Leave None
      for strict f32 accuracy (the 1e-5 self-test requires it).
    """
    B, D = captions.shape
    E = weights.shape[0]
    assert weights.shape == (E, D, D) and biases.shape == (E, D)

    G = E if experts_per_step is None else experts_per_step
    assert E % G == 0 and (G == E or G % 8 == 0), (E, G)
    num_groups = E // G

    # Batch tiling: sublane-aligned tile, batch padded to a whole number of tiles.
    B_pad8 = ((B + 7) // 8) * 8
    if b_tile is None:
        b_tile = min(B_pad8, 256)
    assert b_tile % 8 == 0, b_tile
    B_pad = ((B + b_tile - 1) // b_tile) * b_tile
    num_b_tiles = B_pad // b_tile

    x = captions if B_pad == B else jnp.pad(captions, ((0, B_pad - B), (0, 0)))

    # One-time orientation of the (static) parameters: W[in, e*D + out] so the
    # kernel is a plain x @ W (no in-kernel weight transpose / XLU pressure).
    w_flat = jnp.transpose(weights, (2, 0, 1)).reshape(D, E * D)

    if mxu_dtype is not None:                            # e.g. jnp.bfloat16 on v6e/v7x
        x = x.astype(mxu_dtype)
        w_flat = w_flat.astype(mxu_dtype)

    # VMEM budget: double-buffered tiles + headroom; floor at the smallest
    # scoped default (16 MiB, v5e), cap below v7x's 64 MiB physical VMEM.
    bytes_x = b_tile * D * x.dtype.itemsize
    bytes_w = D * (G * D) * w_flat.dtype.itemsize
    bytes_b = G * D * biases.dtype.itemsize
    bytes_o = b_tile * (G * D) * 4
    vmem_need = 2 * (bytes_x + bytes_w + bytes_b + bytes_o)
    vmem_limit = int(min(60 << 20, max(2 * vmem_need, 16 << 20)))

    cost = pl.CostEstimate(
        flops=2 * B_pad * D * D * E,
        transcendentals=B_pad * E * (D + 1),             # sigmoid + rsqrt
        bytes_accessed=(B_pad * D * x.dtype.itemsize
                        + E * D * D * w_flat.dtype.itemsize
                        + E * D * 4 + B_pad * E * D * 4),
    )

    out_flat = pl.pallas_call(
        gated_embedding_kernel,
        out_shape=jax.ShapeDtypeStruct((B_pad, E * D), jnp.float32),
        grid_spec=pltpu.PrefetchScalarGridSpec(
            num_scalar_prefetch=0,
            # Batch innermost: the (D, G*D) weight block index is constant
            # across the inner axis -> fetched once per group, reused.
            grid=(num_groups, num_b_tiles),
            in_specs=[
                pl.BlockSpec((b_tile, D), lambda gi, bi: (bi, 0)),     # captions
                pl.BlockSpec((D, G * D), lambda gi, bi: (0, gi)),      # group weights
                pl.BlockSpec((G, D), lambda gi, bi: (gi, 0)),          # group biases
            ],
            out_specs=pl.BlockSpec((b_tile, G * D), lambda gi, bi: (bi, gi)),
        ),
        compiler_params=pltpu.CompilerParams(
            # Every (group, batch) output block is written exactly once
            # (no accumulator) -> both axes parallel; shardable on v7x's 2 TCs.
            dimension_semantics=("parallel", "parallel"),
            vmem_limit_bytes=vmem_limit,
        ),
        cost_estimate=cost,
    )(x, w_flat, biases)

    # Free reshape to the torch.stack(outs, dim=1) convention: [B, E, D].
    out = out_flat.reshape(B_pad, E, D)
    return out if B_pad == B else out[:B]


def reference(captions, weights, biases):
    # Pure-JAX reference of the PyTorch forward.
    outs = []
    for e in range(weights.shape[0]):
        z = captions @ weights[e].T + biases[e]
        z = z * jax.nn.sigmoid(z)
        n = jnp.sqrt(jnp.sum(z * z, axis=-1, keepdims=True))
        outs.append(z / jnp.maximum(n, 1e-12))
    return jnp.stack(outs, axis=1)


if __name__ == "__main__":
    # Small, TPU-friendly sizes: batch=16, sem_dim=128, 3 experts.
    # b_tile=8 -> grid (1, 2): exercises the batch-tile axis + pipelining even
    # at this toy size (the big weight block is still fetched only once).
    B, D, E = 16, 128, 3

    key = jax.random.PRNGKey(0)
    kx, kw, kb = jax.random.split(key, 3)

    captions = jax.random.normal(kx, (B, D), dtype=jnp.float32)
    # Deterministic parameter init (synthetic, nn.Linear-like scale).
    weights = jax.random.uniform(kw, (E, D, D), dtype=jnp.float32,
                                 minval=-1.0, maxval=1.0) / jnp.sqrt(D)
    biases = jax.random.uniform(kb, (E, D), dtype=jnp.float32,
                                minval=-1.0, maxval=1.0) / jnp.sqrt(D)

    out = jax.block_until_ready(
        gated_embedding(captions, weights, biases, b_tile=8))

    ref = reference(captions, weights, biases)
    assert out.shape == (B, E, D), out.shape
    assert jnp.allclose(out, ref, atol=1e-5, rtol=1e-5), \
        float(jnp.max(jnp.abs(out - ref)))

    print("KERNEL_OK")
</pallas_src>

<mosaic_0001>
module attributes {stable_mosaic.version = 11 : i64} {
  func.func @gated_embedding_kernel(%arg0: i32, %arg1: i32, %arg2: memref<8x128xf32, #tpu.memory_space<vmem>>, %arg3: memref<128x384xf32, #tpu.memory_space<vmem>>, %arg4: memref<3x128xf32, #tpu.memory_space<vmem>>, %arg5: memref<8x384xf32, #tpu.memory_space<vmem>>) attributes {dimension_semantics = [#tpu.dimension_semantics<parallel>, #tpu.dimension_semantics<parallel>], iteration_bounds = array<i64: 1, 2>, scalar_prefetch = 0 : i64, scratch_operands = 0 : i64, tpu.core_type = #tpu.core_type<tc>, window_params = [{transform_indices = @transform_0, window_bounds = array<i64: 8, 128>}, {transform_indices = @transform_1, window_bounds = array<i64: 128, 384>}, {transform_indices = @transform_2, window_bounds = array<i64: 3, 128>}, {transform_indices = @transform_3, window_bounds = array<i64: 8, 384>}]} {
    %c0 = arith.constant 0 : index
    %c0_0 = arith.constant 0 : index
    %0 = vector.load %arg2[%c0, %c0_0] : memref<8x128xf32, #tpu.memory_space<vmem>>, vector<8x128xf32>
    %c0_1 = arith.constant 0 : index
    %c0_2 = arith.constant 0 : index
    %1 = vector.load %arg3[%c0_1, %c0_2] : memref<128x384xf32, #tpu.memory_space<vmem>>, vector<128x128xf32>
    %cst = arith.constant dense<0.000000e+00> : vector<8x128xf32>
    %2 = tpu.matmul %0, %1, %cst {dimension_numbers = #tpu.dot_dimension_numbers<[1], [0], [0], [1], [0, 0, 1, 1], [], []>} : vector<8x128xf32>, vector<128x128xf32>, vector<8x128xf32> -> vector<8x128xf32>
    %c0_3 = arith.constant 0 : index
    %c0_4 = arith.constant 0 : index
    %3 = vector.load %arg4[%c0_3, %c0_4] : memref<3x128xf32, #tpu.memory_space<vmem>>, vector<1x128xf32>
    %4 = vector.broadcast %3 : vector<1x128xf32> to vector<8x128xf32>
    %5 = arith.addf %2, %4 : vector<8x128xf32>
    %6 = arith.negf %5 : vector<8x128xf32>
    %7 = math.exp %6 : vector<8x128xf32>
    %cst_5 = arith.constant 1.000000e+00 : f32
    %8 = vector.broadcast %cst_5 : f32 to vector<8x128xf32>
    %9 = arith.addf %8, %7 : vector<8x128xf32>
    %10 = arith.divf %8, %9 : vector<8x128xf32>
    %11 = arith.mulf %5, %10 : vector<8x128xf32>
    %12 = arith.mulf %11, %11 : vector<8x128xf32>
    %cst_6 = arith.constant dense<0.000000e+00> : vector<8xf32>
    %13 = vector.multi_reduction <add>, %12, %cst_6 [1] : vector<8x128xf32> to vector<8xf32>
    %14 = vector.shape_cast %13 : vector<8xf32> to vector<8x1xf32>
    %cst_7 = arith.constant 1.000000e-24 : f32
    %15 = vector.broadcast %cst_7 : f32 to vector<8x1xf32>
    %16 = arith.maximumf %14, %15 : vector<8x1xf32>
    %17 = math.rsqrt %16 : vector<8x1xf32>
    %18 = vector.broadcast %17 : vector<8x1xf32> to vector<8x128xf32>
    %19 = arith.mulf %11, %18 : vector<8x128xf32>
    %c0_8 = arith.constant 0 : index
    %c0_9 = arith.constant 0 : index
    %20 = vector.load %arg5[%c0_8, %c0_9] : memref<8x384xf32, #tpu.memory_space<vmem>>, vector<8x128xf32>
    tpu.vector_store %arg5[%c0_8, %c0_9], %19 {strides = array<i32>} : memref<8x384xf32, #tpu.memory_space<vmem>>, vector<8x128xf32>,
    %c0_10 = arith.constant 0 : index
    %c128 = arith.constant 128 : index
    %21 = vector.load %arg3[%c0_10, %c128] : memref<128x384xf32, #tpu.memory_space<vmem>>, vector<128x128xf32>
    %cst_11 = arith.constant dense<0.000000e+00> : vector<8x128xf32>
    %22 = tpu.matmul %0, %21, %cst_11 {dimension_numbers = #tpu.dot_dimension_numbers<[1], [0], [0], [1], [0, 0, 1, 1], [], []>} : vector<8x128xf32>, vector<128x128xf32>, vector<8x128xf32> -> vector<8x128xf32>
    %c1 = arith.constant 1 : index
    %c0_12 = arith.constant 0 : index
    %23 = vector.load %arg4[%c1, %c0_12] : memref<3x128xf32, #tpu.memory_space<vmem>>, vector<1x128xf32>
    %24 = vector.broadcast %23 : vector<1x128xf32> to vector<8x128xf32>
    %25 = arith.addf %22, %24 : vector<8x128xf32>
    %26 = arith.negf %25 : vector<8x128xf32>
    %27 = math.exp %26 : vector<8x128xf32>
    %cst_13 = arith.constant 1.000000e+00 : f32
    %28 = vector.broadcast %cst_13 : f32 to vector<8x128xf32>
    %29 = arith.addf %28, %27 : vector<8x128xf32>
    %30 = arith.divf %28, %29 : vector<8x128xf32>
    %31 = arith.mulf %25, %30 : vector<8x128xf32>
    %32 = arith.mulf %31, %31 : vector<8x128xf32>
    %cst_14 = arith.constant dense<0.000000e+00> : vector<8xf32>
    %33 = vector.multi_reduction <add>, %32, %cst_14 [1] : vector<8x128xf32> to vector<8xf32>
    %34 = vector.shape_cast %33 : vector<8xf32> to vector<8x1xf32>
    %cst_15 = arith.constant 1.000000e-24 : f32
    %35 = vector.broadcast %cst_15 : f32 to vector<8x1xf32>
    %36 = arith.maximumf %34, %35 : vector<8x1xf32>
    %37 = math.rsqrt %36 : vector<8x1xf32>
    %38 = vector.broadcast %37 : vector<8x1xf32> to vector<8x128xf32>
    %39 = arith.mulf %31, %38 : vector<8x128xf32>
    %c0_16 = arith.constant 0 : index
    %c128_17 = arith.constant 128 : index
    %40 = vector.load %arg5[%c0_16, %c128_17] : memref<8x384xf32, #tpu.memory_space<vmem>>, vector<8x128xf32>
    tpu.vector_store %arg5[%c0_16, %c128_17], %39 {strides = array<i32>} : memref<8x384xf32, #tpu.memory_space<vmem>>, vector<8x128xf32>,
    %c0_18 = arith.constant 0 : index
    %c256 = arith.constant 256 : index
    %41 = vector.load %arg3[%c0_18, %c256] : memref<128x384xf32, #tpu.memory_space<vmem>>, vector<128x128xf32>
    %cst_19 = arith.constant dense<0.000000e+00> : vector<8x128xf32>
    %42 = tpu.matmul %0, %41, %cst_19 {dimension_numbers = #tpu.dot_dimension_numbers<[1], [0], [0], [1], [0, 0, 1, 1], [], []>} : vector<8x128xf32>, vector<128x128xf32>, vector<8x128xf32> -> vector<8x128xf32>
    %c2 = arith.constant 2 : index
    %c0_20 = arith.constant 0 : index
    %43 = vector.load %arg4[%c2, %c0_20] : memref<3x128xf32, #tpu.memory_space<vmem>>, vector<1x128xf32>
    %44 = vector.broadcast %43 : vector<1x128xf32> to vector<8x128xf32>
    %45 = arith.addf %42, %44 : vector<8x128xf32>
    %46 = arith.negf %45 : vector<8x128xf32>
    %47 = math.exp %46 : vector<8x128xf32>
    %cst_21 = arith.constant 1.000000e+00 : f32
    %48 = vector.broadcast %cst_21 : f32 to vector<8x128xf32>
    %49 = arith.addf %48, %47 : vector<8x128xf32>
    %50 = arith.divf %48, %49 : vector<8x128xf32>
    %51 = arith.mulf %45, %50 : vector<8x128xf32>
    %52 = arith.mulf %51, %51 : vector<8x128xf32>
    %cst_22 = arith.constant dense<0.000000e+00> : vector<8xf32>
    %53 = vector.multi_reduction <add>, %52, %cst_22 [1] : vector<8x128xf32> to vector<8xf32>
    %54 = vector.shape_cast %53 : vector<8xf32> to vector<8x1xf32>
    %cst_23 = arith.constant 1.000000e-24 : f32
    %55 = vector.broadcast %cst_23 : f32 to vector<8x1xf32>
    %56 = arith.maximumf %54, %55 : vector<8x1xf32>
    %57 = math.rsqrt %56 : vector<8x1xf32>
    %58 = vector.broadcast %57 : vector<8x1xf32> to vector<8x128xf32>
    %59 = arith.mulf %51, %58 : vector<8x128xf32>
    %c0_24 = arith.constant 0 : index
    %c256_25 = arith.constant 256 : index
    %60 = vector.load %arg5[%c0_24, %c256_25] : memref<8x384xf32, #tpu.memory_space<vmem>>, vector<8x128xf32>
    tpu.vector_store %arg5[%c0_24, %c256_25], %59 {strides = array<i32>} : memref<8x384xf32, #tpu.memory_space<vmem>>, vector<8x128xf32>,
    return
  }
  func.func @transform_0(%arg0: i32, %arg1: i32) -> (i32, i32) {
    %c0_i32 = arith.constant 0 : i32
    %c0_i32_0 = arith.constant 0 : i32
    return %arg1, %c0_i32 : i32, i32
  }
  func.func @transform_1(%arg0: i32, %arg1: i32) -> (i32, i32) {
    %c0_i32 = arith.constant 0 : i32
    %c0_i32_0 = arith.constant 0 : i32
    return %c0_i32, %arg0 : i32, i32
  }
  func.func @transform_2(%arg0: i32, %arg1: i32) -> (i32, i32) {
    %c0_i32 = arith.constant 0 : i32
    %c0_i32_0 = arith.constant 0 : i32
    return %arg0, %c0_i32 : i32, i32
  }
  func.func @transform_3(%arg0: i32, %arg1: i32) -> (i32, i32) {
    %c0_i32 = arith.constant 0 : i32
    return %arg1, %arg0 : i32, i32
  }
}

</mosaic_0001>

<bundles_post_ra>
// kernel: tpu_custom_call.1
= control target key start
LH: loop header
LB: loop body
LE: loop exit
PB: predicated region body
PF: predicated region fallthrough
CT: control target
= control target key end

     0   :  { %8 = vsyncpa [#allocation3], 0  ;;  %s1460_s0 = inlined_call_operand.hbm [shape: f32[16,128], index: 0, kind: input, shape index: {}]   ;;  %s1461_s1 = inlined_call_operand.hbm [shape: f32[128,384], index: 1, kind: input, shape index: {}]   ;;  %s1462_s2 = inlined_call_operand.vmem [shape: f32[3,128], index: 2, kind: input, shape index: {}]   ;;  %s1463_s3 = inlined_call_operand.hbm [shape: f32[16,384], index: 3, kind: output, shape index: {}]  }
   0x1   :  { %10 = vsyncpa [#allocation3 + $0x1], 0 }
   0x2   :  { %11 = vsyncpa [#allocation6], 0 }
   0x3   :  { %12 = vsyncpa [#allocation4], 0 }
   0x4   :  { %14 = vsyncpa [#allocation4 + $0x1], 0  ;;  %s1203_s12 = smov 0   ;;  %s1205_s13 = smov 0  }
   0x5   :  { %s1207_s14 = smov 0   ;;  %s1209_s15 = smov 0  }
   0x6   :  { %s1211_s16 = smov 0   ;;  %s1213_s17 = smov 0  }
   0x7 LB: > { %s683_s18 = sadd.s32 4294967295, %s1173_s17   ;;  %s684_s19 = sadd.s32 4294967294, %s1173_s17   ;;  %s1173_s17 = sphi %s1213_s17, %s20_s17   ;;  %s1169_s16 = sphi %s1211_s16, %s1487_s16   ;;  %s1165_s15 = sphi %s1209_s15, %s1486_s15   ;;  %s1161_s14 = sphi %s1207_s14, %s1485_s14   ;;  %s1157_s13 = sphi %s1205_s13, %s1484_s13   ;;  %s1153_s12 = sphi %s1203_s12, %s1483_s12  }
   0x8   : > { %p52_p0 = scmp.ne.s32.totalorder %s1157_s13, %s1153_s12  ;;  %p1237_p1 = scmp.eq.s32.totalorder %s683_s18, 0 }
   0x9   : > { %p1241_p2 = scmp.eq.s32.totalorder %s683_s18, 1  ;;  %p136_p3 = scmp.eq.s32.totalorder %s684_s19, 1 }
   0xa   : > { %s1468_s20 = scalar_select %p1237_p1, 1, 0 }
   0xb   : > { %s1469_s21 = scalar_select %p1241_p2, 1, 0 }
   0xc   : > { %p1247_p4 = por %p1237_p1, %p52_p0  ;;  %p685_p5 = scmp.ge.s32.totalorder %s1173_s17, 1 }
   0xd   : > { %p1252_p6 = por %p136_p3, %p52_p0  ;;  %p143_p7 = scmp.lt.s32.totalorder %s1173_s17, 3 }
   0xe   : > { %s1470_s22 = scalar_select %p1247_p4, 1, 0 }
   0xf   : > { %s1471_s23 = scalar_select %p1252_p6, 1, 0 }
  0x10   : > { %p1257_p8 = pnand %p685_p5, %p143_p7  ;;  %s1175_s25 = smov [#allocation5]  }
  0x11   : > { %s158_s26 = sshll.u32 %s1175_s25, 4  ;;  %s29_s28 = sadd.s32 1, %s1169_s16  ;;  %s159_s26 = int_to_ptr.vmem [resolvable:$true] %s158_s26 }
  0x12   : > { %s1472_s24 = scalar_select %p1257_p8, 1, 0 }
  0x13   : > { %p941_p9 = pneg %p1257_p8  ;;  %s1029_s4 = scalar_lea.hbm %s1461_s1, 6144 }
  0x14   : > { %p1030_p12 = scmp.ne.s32.totalorder %s1461_s1, %s1029_s4  ;;  %p1036_p5 = scmp.lt.u32.totalorder %s1029_s4, %s1461_s1 }
  0x15   : > { %p1266_p11 = pnand %p941_p9, %p1237_p1 }
  0x17   : > { %p1031_p13 = pneg %p1266_p11 }
  0x19   : > { %p1032_p0 = pnand %p1031_p13, %p1030_p12 }
  0x1b   : > { %p1033_p3 = pneg %p1032_p0 }
  0x1d   : > { %p1038_p7 = pnand %p1036_p5, %p1033_p3 }
  0x1f   : > { %1041 = shalt.err (!%p1038_p7)
}
  0x20   : > { %s1042_s9 = scalar_lea.vmem %s159_s26, 6144  ;;  %p1050_p1 = scmp.lt.s32.totalorder %s159_s26, %s159_s26 }
  0x21   : > { %p1043_p9 = scmp.ne.s32.totalorder %s159_s26, %s1042_s9  ;;  %p1051_p4 = scmp.lt.s32.totalorder %s1042_s9, %s1042_s9 }
  0x23   : > { %p1045_p10 = pnand %p1043_p9, %p1031_p13  ;;  %p1052_p8 = por %p1051_p4, %p1050_p1 }
  0x25   : > { %p1046_p6 = pneg %p1045_p10 }
  0x27   : > { %p1053_p2 = pnand %p1052_p8, %p1046_p6 }
  0x29   : > { %1056 = shalt.err (!%p1053_p2)
}
  0x2a   : > { %s1176_s10 = smov 384   ;;  %s1177_s11 = smov 24  }
  0x2b   : > { %944 = dma.hbm_to_vmem [thread:$0]  (!%p1266_p11), %s1461_s1, 6144, %s159_s26, [#allocation6], %s1176_s10, %s1176_s10, %s1177_s11  }
  0x2c   : > { %p30_p1 = scmp.ge.s32.totalorder %s29_s28, 2  ;;  %s39_s25 = sadd.s32 1, %s1161_s14 }
  0x2d   : > { %p46_p2 = scmp.ne.s32.totalorder %s1161_s14, %s1157_s13  ;;  %p47_p4 = scmp.eq.s32.totalorder %s1173_s17, 0 }
  0x2e   : > { %s1489_s28 = smov (%p30_p1, %s29_s28), 0  ;;  %p1475_p8 = scmp.ne.s32.totalorder %s1469_s21, 0 }
  0x2f   : > { %p1293_p6 = por %p47_p4, %p46_p2  ;;  %s36_s27 = ssub.s32 %s1169_s16, %s1489_s28 }
  0x30   : > { %p1299_p10 = por %p1475_p8, %p46_p2  ;;  %p954_p12 = scmp.lt.s32.totalorder %s1173_s17, 2 }
  0x31   : > { %p37_p11 = scmp.eq.s32.totalorder %s36_s27, 0  ;;  %s179_s26 = sand.u32 1, %s1161_s14  }
  0x32   : > { %s689_s4 = sshll.u32 %s179_s26, 3  ;;  %s690_s6 = sshll.u32 %s1169_s16, 7 }
  0x33   : > { %s1308_s5 = scalar_select %p37_p11, %s1161_s14, %s39_s25  }
  0x34   : > { %s1314_s9 = scalar_lea.hbm %s1460_s0, %s690_s6  ;;  %s183_s21 = scalar_lea.vmem [#allocation2], %s689_s4 }
  0x35   : > { %s190_s10 = sshll.u32 %s183_s21, 4  ;;  %p1320_p13 = pnand %p954_p12, %p1293_p6  ;;  %s1316_s10 = int_to_ptr.vmem [resolvable:$true] %s190_s10 }
  0x36   : > { %s180_s18 = scalar_lea.sflag [#allocation3], %s179_s26  ;;  %s1057_s19 = scalar_lea.hbm %s1314_s9, 128 }
  0x37   : > { %p1058_p0 = scmp.ne.s32.totalorder %s1314_s9, %s1057_s19  ;;  %p1059_p3 = pneg %p1320_p13 }
  0x38   : > { %s1062_s4 = scalar_lea.hbm %s1460_s0, 256  ;;  %p1063_p9 = scmp.lt.u32.totalorder %s1314_s9, %s1460_s0 }
  0x39   : > { %p1060_p5 = pnand %p1059_p3, %p1058_p0  ;;  %p1064_p1 = scmp.lt.u32.totalorder %s1062_s4, %s1057_s19 }
  0x3a   : > { %p1066_p4 = scmp.lt.u32.totalorder %s1057_s19, %s1314_s9 }
  0x3b   : > { %p1061_p7 = pneg %p1060_p5  ;;  %p1065_p2 = por %p1064_p1, %p1063_p9 }
  0x3d   : > { %p1067_p6 = por %p1066_p4, %p1065_p2 }
  0x3f   : > { %p1068_p8 = pnand %p1067_p6, %p1061_p7 }
  0x41   : > { %1071 = shalt.err (!%p1068_p8)
}
  0x42   : > { %s1072_s26 = scalar_lea.vmem %s1316_s10, 128  ;;  %s1178_s7 = smov [#allocation2]  }
  0x43   : > { %p1073_p12 = scmp.ne.s32.totalorder %s1316_s10, %s1072_s26  ;;  %s1077_s8 = sshll.u32 %s1178_s7, 4  ;;  %s1078_s8 = int_to_ptr.vmem [resolvable:$false] %s1077_s8 }
  0x44   : > { %s1079_s21 = scalar_lea.vmem %s1078_s8, 256  ;;  %p1080_p5 = scmp.lt.s32.totalorder %s1316_s10, %s1078_s8 }
  0x45   : > { %p1075_p11 = pnand %p1073_p12, %p1059_p3  ;;  %p1081_p9 = scmp.lt.s32.totalorder %s1079_s21, %s1072_s26 }
  0x47   : > { %p1076_p0 = pneg %p1075_p11  ;;  %p1082_p1 = por %p1081_p9, %p1080_p5 }
  0x49   : > { %p1083_p2 = pnand %p1082_p1, %p1076_p0 }
  0x4b   : > { %1086 = shalt.err (!%p1083_p2)
}
  0x4c   : > { %948 = dma.hbm_to_vmem [thread:$0]  (!%p1320_p13), %s1314_s9, 128, %s1316_s10, %s180_s18  }
  0x4d   : > { %p1478_p7 = scmp.ne.s32.totalorder %s1472_s24, 0 }
  0x4e   : > { %s1352_s19 = sand.u32 (!%p1478_p7), 1, %s1157_s13   ;;  %p1479_p3 = scmp.ne.s32.totalorder (!%p1478_p7), %s1470_s22, 0 }
  0x4f   : > { %199 = sbr.rel (%p1478_p7) target bundleno = 572 (0x23c), region = 32  ;;  %s692_s25 = sshll.u32 (!%p1478_p7), %s1352_s19, 3 }
  0x50   : > { %s202_s27 = scalar_lea.sflag (!%p1478_p7), [#allocation3], %s1352_s19  ;;  %s1356_s4 = scalar_lea.vmem (!%p1478_p7), [#allocation2], %s692_s25 }
  0x56   : > { %1140 = dma.done.wait (%p1479_p3), %s202_s27, 128  }
  0x57   : > { %1142 = vsyncadd (%p1479_p3), %s202_s27, 4294967168  ;;  %p1480_p13 = scmp.ne.s32.totalorder %s1468_s20, 0 }
  0x59   : > { %1144 = dma.done.wait (%p1480_p13), [#allocation6], 6144  }
  0x5a   : > { %1146 = vsyncadd (%p1480_p13), [#allocation6], 4294961152  ;;  %v1179_v0 = vmov 0.0|0.0   ;;  %vm1180_vm0 = vmmov 0   ;;  %v1181_v1 = vmov 0.0   ;;  %v243_v2 = vld [vmem:[#allocation5] sm:$0xff] }
  0x5b   : > { %859 = vmatprep.subr.bf16.mxu0 %v1179_v0  ;;  %883 = vmatprep.subr.bf16.mxu1 %v1179_v0  ;;  %v244_v3 = vld [vmem:[#allocation5 + $0x18] sm:$0xff]  ;;  %v245_v4 = vld [vmem:[#allocation5 + $0x30] sm:$0xff]  ;;  %v246_v6 = vld [vmem:[#allocation5 + $0x48] sm:$0xff]  ;;  %s931_s18 = smul.u32 24, %s1352_s19  ;;  %s559_s25 = scalar_lea.sflag [#allocation4], %s1352_s19 }
  0x5c   : > { %786 = vmatprep.mubr.msk.f32.mxu0 %vm1180_vm0, %v1181_v1  ;;  %821 = vmatprep.mubr.msk.f32.mxu1 %vm1180_vm0, %v1181_v1  ;;  %v860_v5 = vpack.c.bf16 %v244_v3, %v243_v2  ;;  %v348_v7 = vld [vmem:[#allocation5 + $0x8] sm:$0xff]  ;;  %v349_v8 = vld [vmem:[#allocation5 + $0x20] sm:$0xff]  ;;  %v350_v10 = vld [vmem:[#allocation5 + $0x38] sm:$0xff]  ;;  %v863_v11 = vpack.c.bf16 %v246_v6, %v245_v4  ;;  %s932_s6 = smul.u32 384, %s1165_s15  ;;  %s1182_s15 = smov [#allocation7]  }
  0x5d   : > { %v884_v9 = vpack.c.bf16 %v349_v8, %v348_v7  ;;  %v351_v12 = vld [vmem:[#allocation5 + $0x50] sm:$0xff]  ;;  %v247_v13 = vld [vmem:[#allocation5 + $0x60] sm:$0xff]  ;;  %v248_v14 = vld [vmem:[#allocation5 + $0x78] sm:$0xff]  ;;  %s235_s29 = scalar_lea.vmem [#allocation7], %s931_s18 }
  0x5e   : > { %861 = vmatpush3.bf16.msra.mxu0 %v860_v5  ;;  %v887_v15 = vpack.c.bf16 %v351_v12, %v350_v10  ;;  %v352_v16 = vld [vmem:[#allocation5 + $0x68] sm:$0xff]  ;;  %v353_v17 = vld [vmem:[#allocation5 + $0x80] sm:$0xff]  ;;  %v866_v18 = vpack.c.bf16 %v248_v14, %v247_v13  ;;  %v249_v19 = vld [vmem:[#allocation5 + $0x90] sm:$0xff]  ;;  %s575_s26 = sshll.u32 %s235_s29, 4  ;;  %s1411_s21 = scalar_lea.hbm %s1463_s3, %s932_s6  ;;  %s1413_s26 = int_to_ptr.vmem [resolvable:$true] %s575_s26 }
  0x5f   : > { %862 = vmatprep.subr.bf16.mxu0 %v1179_v0  ;;  %885 = vmatpush3.bf16.msra.mxu1 %v884_v9  ;;  %v250_v20 = vld [vmem:[#allocation5 + $0xa8] sm:$0xff]  ;;  %v890_v21 = vpack.c.bf16 %v353_v17, %v352_v16  ;;  %v354_v22 = vld [vmem:[#allocation5 + $0x98] sm:$0xff]  ;;  %v355_v23 = vld [vmem:[#allocation5 + $0xb0] sm:$0xff]  ;;  %s1087_s27 = scalar_lea.vmem %s1413_s26, 384 }
  0x60   : > { %886 = vmatprep.subr.bf16.mxu1 %v1179_v0  ;;  %v869_v24 = vpack.c.bf16 %v250_v20, %v249_v19  ;;  %v251_v25 = vld [vmem:[#allocation5 + $0xc0] sm:$0xff]  ;;  %v252_v26 = vld [vmem:[#allocation5 + $0xd8] sm:$0xff]  ;;  %v893_v27 = vpack.c.bf16 %v355_v23, %v354_v22  ;;  %v356_v28 = vld [vmem:[#allocation5 + $0xc8] sm:$0xff]  ;;  %p1088_p4 = scmp.ne.s32.totalorder %s1413_s26, %s1087_s27 }
  0x61   : > { %v357_v29 = vld [vmem:[#allocation5 + $0xe0] sm:$0xff]  ;;  %v872_v30 = vpack.c.bf16 %v252_v26, %v251_v25  ;;  %v253_v31 = vld [vmem:[#allocation5 + $0xf0] sm:$0xff]  ;;  %v254_v32 = vld [vmem:[#allocation5 + $0x108] sm:$0xff] }
  0x62   : > { %864 = vmatpush3.bf16.msra.mxu0 %v863_v11  ;;  %v896_v33 = vpack.c.bf16 %v357_v29, %v356_v28  ;;  %v358_v34 = vld [vmem:[#allocation5 + $0xf8] sm:$0xff]  ;;  %v359_v35 = vld [vmem:[#allocation5 + $0x110] sm:$0xff]  ;;  %v875_v36 = vpack.c.bf16 %v254_v32, %v253_v31  ;;  %v255_v37 = vld [vmem:[#allocation5 + $0x120] sm:$0xff]  ;;  %p1089_p6 = pnand %p1088_p4, %p1299_p10 }
  0x63   : > { %865 = vmatprep.subr.bf16.mxu0 %v1179_v0  ;;  %888 = vmatpush3.bf16.msra.mxu1 %v887_v15  ;;  %v256_v38 = vld [vmem:[#allocation5 + $0x138] sm:$0xff]  ;;  %v899_v39 = vpack.c.bf16 %v359_v35, %v358_v34  ;;  %v360_v40 = vld [vmem:[#allocation5 + $0x128] sm:$0xff]  ;;  %v361_v41 = vld [vmem:[#allocation5 + $0x140] sm:$0xff] }
  0x64   : > { %889 = vmatprep.subr.bf16.mxu1 %v1179_v0  ;;  %v878_v42 = vpack.c.bf16 %v256_v38, %v255_v37  ;;  %v257_v43 = vld [vmem:[#allocation5 + $0x150] sm:$0xff]  ;;  %v258_v44 = vld [vmem:[#allocation5 + $0x168] sm:$0xff]  ;;  %v902_v45 = vpack.c.bf16 %v361_v41, %v360_v40  ;;  %v362_v46 = vld [vmem:[#allocation5 + $0x158] sm:$0xff]  ;;  %p1090_p8 = pneg %p1089_p6 }
  0x65   : > { %v363_v47 = vld [vmem:[#allocation5 + $0x170] sm:$0xff]  ;;  %v881_v48 = vpack.c.bf16 %v258_v44, %v257_v43  ;;  %v454_v51 = vld [vmem:[#allocation5 + $0x28] sm:$0xff]  ;;  %v455_v54 = vld [vmem:[#allocation5 + $0x40] sm:$0xff] }
  0x66   : > { %867 = vmatpush3.bf16.msra.mxu0 %v866_v18  ;;  %v905_v49 = vpack.c.bf16 %v363_v47, %v362_v46  ;;  %v453_v50 = vld [vmem:[#allocation5 + $0x10] sm:$0xff]  ;;  %v456_v55 = vld [vmem:[#allocation5 + $0x58] sm:$0xff]  ;;  %v458_v58 = vld [vmem:[#allocation5 + $0x88] sm:$0xff] }
  0x67   : > { %868 = vmatprep.subr.bf16.mxu0 %v1179_v0  ;;  %891 = vmatpush3.bf16.msra.mxu1 %v890_v21  ;;  %v242_v52 = vld [vmem:[%s1356_s4] sm:$0xff]  ;;  %v908_v53 = vpack.c.bf16 %v454_v51, %v453_v50  ;;  %v911_v56 = vpack.c.bf16 %v456_v55, %v455_v54  ;;  %v459_v60 = vld [vmem:[#allocation5 + $0xa0] sm:$0xff]  ;;  %v462_v2 = vld [vmem:[#allocation5 + $0xe8] sm:$0xff]  ;;  %s1091_s4 = sshll.u32 %s1182_s15, 4  ;;  %s1092_s4 = int_to_ptr.vmem [resolvable:$false] %s1091_s4 }
  0x68   : > { %892 = vmatprep.subr.bf16.mxu1 %v1179_v0  ;;  %v457_v57 = vld [vmem:[#allocation5 + $0x70] sm:$0xff]  ;;  %v460_v61 = vld [vmem:[#allocation5 + $0xb8] sm:$0xff]  ;;  %v463_v4 = vld [vmem:[#allocation5 + $0x100] sm:$0xff]  ;;  %s1093_s20 = scalar_lea.vmem %s1092_s4, 768  ;;  %p1094_p12 = scmp.lt.s32.totalorder %s1413_s26, %s1092_s4 }
  0x69   : > { %v914_v59 = vpack.c.bf16 %v458_v58, %v457_v57  ;;  %v917_v62 = vpack.c.bf16 %v460_v61, %v459_v60  ;;  %v461_v63 = vld [vmem:[#allocation5 + $0xd0] sm:$0xff]  ;;  %v464_v5 = vld [vmem:[#allocation5 + $0x118] sm:$0xff]  ;;  %v466_v7 = vld [vmem:[#allocation5 + $0x148] sm:$0xff]  ;;  %p1095_p11 = scmp.lt.s32.totalorder %s1093_s20, %s1087_s27 }
  0x6a   : > { %870 = vmatpush3.bf16.msra.mxu0 %v869_v24  ;;  %v920_v3 = vpack.c.bf16 %v462_v2, %v461_v63  ;;  %v465_v6 = vld [vmem:[#allocation5 + $0x130] sm:$0xff]  ;;  %v467_v9 = vld [vmem:[#allocation5 + $0x160] sm:$0xff]  ;;  %v468_v10 = vld [vmem:[#allocation5 + $0x178] sm:$0xff] }
  0x6b   : > { %871 = vmatprep.subr.bf16.mxu0 %v1179_v0  ;;  %894 = vmatpush3.bf16.msra.mxu1 %v893_v27  ;;  %v926_v8 = vpack.c.bf16 %v466_v7, %v465_v6  ;;  %v929_v11 = vpack.c.bf16 %v468_v10, %v467_v9  ;;  %v694_v12 = vld [vmem:[%s1462_s2] ss:$0 sm:$0xff]  ;;  %v696_v13 = vld [vmem:[%s1462_s2 + $0x1] ss:$0 sm:$0xff]  ;;  %v698_v29 = vld [vmem:[%s1462_s2 + $0x2] ss:$0 sm:$0xff]  ;;  %p1096_p0 = por %p1095_p11, %p1094_p12 }
  0x6c   : > { %895 = vmatprep.subr.bf16.mxu1 %v1179_v0 }
  0x6d   : > { %p1097_p5 = pnand %p1096_p0, %p1090_p8 }
  0x6e   : > { %873 = vmatpush3.bf16.msra.mxu0 %v872_v30 }
  0x6f   : > { %874 = vmatprep.subr.bf16.mxu0 %v1179_v0  ;;  %897 = vmatpush3.bf16.msra.mxu1 %v896_v33 }
  0x70   : > { %898 = vmatprep.subr.bf16.mxu1 %v1179_v0 }
  0x72   : > { %876 = vmatpush3.bf16.msra.mxu0 %v875_v36 }
  0x73   : > { %877 = vmatprep.subr.bf16.mxu0 %v1179_v0  ;;  %900 = vmatpush3.bf16.msra.mxu1 %v899_v39 }
  0x74   : > { %901 = vmatprep.subr.bf16.mxu1 %v1179_v0 }
  0x76   : > { %879 = vmatpush3.bf16.msra.mxu0 %v878_v42 }
  0x77   : > { %880 = vmatprep.subr.bf16.mxu0 %v1179_v0  ;;  %903 = vmatpush3.bf16.msra.mxu1 %v902_v45 }
  0x78   : > { %904 = vmatprep.subr.bf16.mxu1 %v1179_v0 }
  0x7a   : > { %882 = vmatpush3.bf16.msra.mxu0 %v881_v48 }
  0x7b   : > { %907 = vmatprep.subr.bf16.mxu0 %v1179_v0  ;;  %906 = vmatpush3.bf16.msra.mxu1 %v905_v49 }
  0x7d   : > { %787 = vmatmul.mubr.f32.vlgmr.msra.gmra.mrb[0].mxu0 %v242_v52 }
  0x7e   : > { %909 = vmatpush3.bf16.msra.mxu0 %v908_v53  ;;  %822 = vmatmul.mubr.f32.vlgmr.msra.gmra.mrb[0].mxu1 %v242_v52 }
  0x7f   : > { %910 = vmatprep.subr.bf16.mxu0 %v1179_v0  ;;  %856 = vmatprep.mubr.msk.f32.mxu0 %vm1180_vm0, %v1181_v1  ;;  %v923_v1 = vpack.c.bf16 %v464_v5, %v463_v4 }
  0x82   : > { %912 = vmatpush3.bf16.msra.mxu0 %v911_v56 }
  0x83   : > { %913 = vmatprep.subr.bf16.mxu0 %v1179_v0 }
  0x86   : > { %915 = vmatpush3.bf16.msra.mxu0 %v914_v59 }
  0x87   : > { %916 = vmatprep.subr.bf16.mxu0 %v1179_v0 }
  0x8a   : > { %918 = vmatpush3.bf16.msra.mxu0 %v917_v62 }
  0x8b   : > { %919 = vmatprep.subr.bf16.mxu0 %v1179_v0 }
  0x8e   : > { %921 = vmatpush3.bf16.msra.mxu0 %v920_v3 }
  0x8f   : > { %922 = vmatprep.subr.bf16.mxu0 %v1179_v0 }
  0x92   : > { %924 = vmatpush3.bf16.msra.mxu0 %v923_v1 }
  0x93   : > { %925 = vmatprep.subr.bf16.mxu0 %v1179_v0 }
  0x96   : > { %927 = vmatpush3.bf16.msra.mxu0 %v926_v8 }
  0x97   : > { %928 = vmatprep.subr.bf16.mxu0 %v1179_v0 }
  0x9a   : > { %930 = vmatpush3.bf16.msra.mxu0 %v929_v11 }
  0x9d   : > { %857 = vmatmul.mubr.f32.vlgmr.msra.gmra.mrb[2].mxu0 %v242_v52 }
 0x150   : > { %v330_v14 = vpop.f32.mrb[0].mxu0 }
 0x151   : > { %v331_v15 = vadd.f32 %v694_v12, %v330_v14  ;;  %v788_v16 = vpop.f32.mrb[1].mxu0  ;;  %v435_v17 = vpop.f32.mrb[0].mxu1 }
 0x152   : > { %v436_v18 = vadd.f32 %v696_v13, %v435_v17  ;;  %v823_v19 = vpop.f32.mrb[1].mxu1 }
 0x153   : > { %v695_v20 = vmul.f32 -1.442695, %v331_v15 }
 0x154   : > { %v697_v21 = vmul.f32 -1.442695, %v436_v18 }
 0x155   : > { %1011 = vpow2.f32 %v695_v20 }
 0x156   : > { %1013 = vpow2.f32 %v697_v21 }
 0x15f   : > { %v1012_v0 = vpop.eup %1011 }
 0x160   : > { %v1014_v22 = vpop.eup %1013  ;;  %v337_v23 = vadd.f32 1.0, %v1012_v0 }
 0x161   : > { %v442_v24 = vadd.f32 1.0, %v1014_v22 }
 0x162   : > { %1015 = vrcp.f32 %v337_v23 }
 0x163   : > { %1017 = vrcp.f32 %v442_v24 }
 0x16c   : > { %v1016_v25 = vpop.eup %1015 }
 0x16d   : > { %v1018_v26 = vpop.eup %1017  ;;  %v340_v27 = vmul.f32 %v1016_v25, %v331_v15 }
 0x16e   : > { %v445_v28 = vmul.f32 %v1018_v26, %v436_v18 }
 0x16f   : > { %v341_v30 = vmul.f32 %v340_v27, %v340_v27 }
 0x170   : > { %v540_v31 = vpop.f32.mrb[2].mxu0  ;;  %v446_v34 = vmul.f32 %v445_v28, %v445_v28 }
 0x171   : > { %v541_v32 = vadd.f32 %v698_v29, %v540_v31  ;;  %342 = vadd.xlane.f32.xlu0 %v341_v30  ;;  %v858_v33 = vpop.f32.mrb[3].mxu0 }
 0x173   : > { %v699_v35 = vmul.f32 -1.442695, %v541_v32 }
 0x175   : > { %1019 = vpow2.f32 %v699_v35  ;;  %447 = vadd.xlane.f32.xlu0 %v446_v34 }
 0x17f   : > { %v1020_v36 = vpop.eup %1019 }
 0x180   : > { %v547_v37 = vadd.f32 1.0, %v1020_v36 }
 0x182   : > { %1021 = vrcp.f32 %v547_v37 }
 0x18c   : > { %v1022_v38 = vpop.eup %1021 }
 0x18d   : > { %v550_v39 = vmul.f32 %v1022_v38, %v541_v32 }
 0x18f   : > { %v551_v40 = vmul.f32 %v550_v39, %v550_v39 }
 0x191   : > { %552 = vadd.xlane.f32.xlu1 %v551_v40 }
 0x1fe   : > { %v343_v41 = vpop.xlane.xlu0 %342 }
 0x1ff   : > { %v344_v42 = vmax.f32 %v343_v41, 1e-24 }
 0x201   : > { %1023 = vrsqrt.f32 %v344_v42 }
 0x202   : > { %v448_v43 = vpop.xlane.xlu0 %447 }
 0x203   : > { %v449_v44 = vmax.f32 %v448_v43, 1e-24 }
 0x205   : > { %1025 = vrsqrt.f32 %v449_v44 }
 0x20b   : > { %v1024_v45 = vpop.eup %1023 }
 0x20c   : > { %v346_v46 = vmul.f32 %v1024_v45, %v340_v27 }
 0x20e   : > { %347 = vst [vmem:[%s235_s29] sm:$0xff] %v346_v46 }
 0x20f   : > { %v1026_v47 = vpop.eup %1025 }
 0x210   : > { %v451_v48 = vmul.f32 %v1026_v47, %v445_v28 }
 0x212   : > { %452 = vst [vmem:[%s235_s29 + $0x8] sm:$0xff] %v451_v48 }
 0x21e   : > { %v553_v49 = vpop.xlane.xlu1 %552 }
 0x21f   : > { %v554_v50 = vmax.f32 %v553_v49, 1e-24 }
 0x221   : > { %1027 = vrsqrt.f32 %v554_v50 }
 0x22b   : > { %v1028_v51 = vpop.eup %1027 }
 0x22c   : > { %v556_v52 = vmul.f32 %v1028_v51, %v550_v39 }
 0x22e   : > { %557 = vst [vmem:[%s235_s29 + $0x10] sm:$0xff] %v556_v52 }
 0x22f   : > { %1100 = shalt.err (!%p1097_p5)
}
 0x230   : > { %s1101_s19 = scalar_lea.hbm %s1411_s21, 384  ;;  %s1105_s9 = scalar_lea.hbm %s1463_s3, 768 }
 0x231   : > { %p1102_p9 = scmp.ne.s32.totalorder %s1411_s21, %s1101_s19  ;;  %p1106_p7 = scmp.lt.u32.totalorder %s1411_s21, %s1463_s3 }
 0x232   : > { %p1107_p3 = scmp.lt.u32.totalorder %s1105_s9, %s1101_s19  ;;  %p1109_p4 = scmp.lt.u32.totalorder %s1101_s19, %s1411_s21 }
 0x233   : > { %p1103_p1 = pnand %p1102_p9, %p1299_p10 }
 0x234   : > { %p1108_p13 = por %p1107_p3, %p1106_p7 }
 0x235   : > { %p1104_p2 = pneg %p1103_p1 }
 0x236   : > { %p1110_p6 = por %p1109_p4, %p1108_p13 }
 0x238   : > { %p1111_p8 = pnand %p1110_p6, %p1104_p2 }
 0x23a   : > { %1114 = shalt.err (!%p1111_p8)
}
 0x23b   : > { %939 = dma.vmem_to_hbm [thread:$0]  (%p1299_p10), %s1413_s26, 384, %s1411_s21, %s559_s25  }
 0x23c PF: > { %s587_s18 = sand.u32 1, %s1153_s12   ;;  %p1481_p12 = scmp.ne.s32.totalorder %s1471_s23, 0 }
 0x23d   : > { %p1482_p11 = scmp.ge.s32.totalorder %s1173_s17, 2  ;;  %s588_s29 = scalar_lea.sflag [#allocation4], %s587_s18 }
 0x23f   : > { %p950_p0 = pnand %p1482_p11, %p1481_p12 }
 0x241   : > { %1148 = dma.done.wait (!%p950_p0), %s588_s29, 384  }
 0x242   : > { %1150 = vsyncadd (!%p950_p0), %s588_s29, 4294966912  ;;  %s20_s17 = sadd.s32 1, %s1173_s17   ;;  %s1483_s12 = smov %s1157_s13 }
 0x243   : > { %p17_p5 = scmp.ge.s32.totalorder %s20_s17, 4   ;;  %s1484_s13 = smov %s1161_s14 }
 0x244   : > { %s1485_s14 = smov %s1308_s5  ;;  %s1486_s15 = smov %s1169_s16 }
 0x245   : > { %s1487_s16 = smov %s1489_s28  ;;  %19 = sbr.rel (!%p17_p5) target bundleno = 7 (0x7), region = 85 }
 0x24c   :  { %593 = vsyncpa [#allocation3], 1 }
 0x24d   :  { %595 = vsyncpa [#allocation3 + $0x1], 1 }
 0x24e   :  { %596 = vsyncpa [#allocation6], 1 }
 0x24f   :  { %597 = vsyncpa [#allocation4], 1 }
 0x250   :  { %599 = vsyncpa [#allocation4 + $0x1], 1 }

</bundles_post_ra>
